<compile_context>
chip_gen: v6e
topology: v6e:2x2x1
jax: 0.10.0
libtpu: 0.0.40
codegen_flags: <defaults>
</compile_context>

<pallas_src>
import functools

import jax
import jax.numpy as jnp
from jax.experimental import pallas as pl
from jax.experimental.pallas import tpu as pltpu


def _round_up(x: int, m: int) -> int:
    return ((x + m - 1) // m) * m


def _weighted_sum_kernel(w_ref, t_ref, o_ref, *, n_out: int, n_rules: int):
    # Per grid step: w_ref -> (TB, n_rules), t_ref -> (TB, n_out*n_rules),
    # o_ref -> (TB, n_out).
    w = w_ref[...].astype(jnp.float32)          # (TB, n_rules)
    t = t_ref[...].astype(jnp.float32)          # (TB, n_out * n_rules)

    # Static unroll over the (small) output dim; each slice is a static lane
    # slice of the flattened tsk tile, multiplied on the VPU and reduced over
    # the rules (lane) axis on the XLU.  Avoids an in-kernel relayout/reshape.
    cols = []
    for o in range(n_out):
        seg = t[:, o * n_rules:(o + 1) * n_rules]          # (TB, n_rules)
        cols.append(jnp.sum(seg * w, axis=-1, keepdims=True))
    y = cols[0] if n_out == 1 else jnp.concatenate(cols, axis=-1)  # (TB, n_out)

    o_ref[...] = y.astype(o_ref.dtype)


def _choose_block_cases(n_cases: int, n_out: int, n_rules: int,
                        in_itemsize: int, out_itemsize: int,
                        budget_bytes: int) -> int:
    """Pick the batch tile TB: as big as the VMEM budget allows, multiple of 8,
    but small enough that the grid keeps >= ~8 steps for pipelining/megacore."""
    lane = 128
    # Per-case VMEM footprint of the (lane-padded) tiles.
    per_case = (
        _round_up(n_out * n_rules, lane) * in_itemsize     # tsk tile
        + _round_up(n_rules, lane) * in_itemsize           # weights tile
        + _round_up(n_out, lane) * out_itemsize            # output tile
    )
    tb = budget_bytes // (2 * per_case)                    # 2x: double buffering
    tb = max(8, min(4096, (tb // 8) * 8))
    # Cap so the grid has at least ~8 steps (keeps DMA pipeline + both v7x TCs busy).
    tb_for_steps = max(8, _round_up(-(-n_cases // 8), 8))
    return min(tb, tb_for_steps)


def weighted_sum(weights: jax.Array, tsk: jax.Array,
                 *, vmem_budget_bytes: int = 8 * 1024 * 1024) -> jax.Array:
    """y[b, o] = sum_r tsk[b, o, r] * weights[b, r]  (== bmm(tsk, w[...,None]).squeeze(-1))."""
    n_cases, n_rules = weights.shape
    nc2, n_out, nr2 = tsk.shape
    assert nc2 == n_cases and nr2 == n_rules

    out_dtype = jnp.result_type(weights.dtype, tsk.dtype)

    # Tiny problems: pallas_call launch + per-step overhead dominates; let XLA fuse it.
    if n_cases < 64:
        y = jnp.einsum("bor,br->bo",
                       tsk.astype(jnp.float32), weights.astype(jnp.float32))
        return y.astype(out_dtype)

    in_itemsize = max(jnp.dtype(weights.dtype).itemsize, jnp.dtype(tsk.dtype).itemsize)
    out_itemsize = jnp.dtype(out_dtype).itemsize
    tb = _choose_block_cases(n_cases, n_out, n_rules,
                             in_itemsize, out_itemsize, vmem_budget_bytes)

    # Flatten tsk's trailing dims (free: contiguous) -> lane-dense trailing axis.
    tsk2 = tsk.reshape(n_cases, n_out * n_rules)

    # Pad the batch to a multiple of TB so every block is full (ragged tail handled
    # in the wrapper; padded rows are dropped after the kernel).
    n_pad = _round_up(n_cases, tb)
    if n_pad != n_cases:
        pad = n_pad - n_cases
        weights_p = jnp.pad(weights, ((0, pad), (0, 0)))
        tsk2_p = jnp.pad(tsk2, ((0, pad), (0, 0)))
    else:
        weights_p, tsk2_p = weights, tsk2

    kernel = functools.partial(_weighted_sum_kernel, n_out=n_out, n_rules=n_rules)

    y_p = pl.pallas_call(
        kernel,
        out_shape=jax.ShapeDtypeStruct((n_pad, n_out), out_dtype),
        grid_spec=pltpu.PrefetchScalarGridSpec(
            num_scalar_prefetch=0,
            grid=(n_pad // tb,),
            in_specs=[
                pl.BlockSpec((tb, n_rules), lambda b: (b, 0)),          # weights
                pl.BlockSpec((tb, n_out * n_rules), lambda b: (b, 0)),  # tsk (flattened)
            ],
            out_specs=pl.BlockSpec((tb, n_out), lambda b: (b, 0)),
        ),
        compiler_params=pltpu.CompilerParams(
            dimension_semantics=("parallel",),
            vmem_limit_bytes=32 * 1024 * 1024,  # safe on v5e/v6e/v7x; TB sized well below this
        ),
    )(weights_p, tsk2_p)

    return y_p[:n_cases]


if __name__ == "__main__":
    key = jax.random.PRNGKey(0)
    k_w, k_t = jax.random.split(key)

    # Small but non-trivial: ragged batch (not a multiple of the block tile),
    # odd n_out — exercises the padding path and non-power-of-2 trailing dims.
    n_cases, n_out, n_rules = 250, 3, 16
    weights = jax.random.uniform(k_w, (n_cases, n_rules), dtype=jnp.float32)
    tsk = jax.random.normal(k_t, (n_cases, n_out, n_rules), dtype=jnp.float32)

    # f32 path
    y = jax.block_until_ready(weighted_sum(weights, tsk))
    y_ref = jnp.einsum("bor,br->bo", tsk, weights)
    assert y.shape == (n_cases, n_out)
    assert y.dtype == jnp.float32
    assert jnp.allclose(y, y_ref, atol=1e-5, rtol=1e-5)

    # bf16 inputs: half the HBM read traffic; kernel upcasts to f32 for the
    # multiply/reduce and emits bf16 output (matching result_type of inputs).
    w_bf = weights.astype(jnp.bfloat16)
    t_bf = tsk.astype(jnp.bfloat16)
    y_bf = jax.block_until_ready(weighted_sum(w_bf, t_bf))
    y_bf_ref = jnp.einsum("bor,br->bo",
                          t_bf.astype(jnp.float32), w_bf.astype(jnp.float32))
    assert y_bf.shape == (n_cases, n_out)
    assert y_bf.dtype == jnp.bfloat16
    assert jnp.allclose(y_bf.astype(jnp.float32), y_bf_ref, atol=2e-2, rtol=2e-2)

    print("KERNEL_OK")
</pallas_src>

<mosaic_0001>
module attributes {stable_mosaic.version = 11 : i64} {
  func.func @_weighted_sum_kernel(%arg0: i32, %arg1: memref<32x16xf32, #tpu.memory_space<vmem>>, %arg2: memref<32x48xf32, #tpu.memory_space<vmem>>, %arg3: memref<32x3xf32, #tpu.memory_space<vmem>>) attributes {dimension_semantics = [#tpu.dimension_semantics<parallel>], iteration_bounds = array<i64: 8>, scalar_prefetch = 0 : i64, scratch_operands = 0 : i64, tpu.core_type = #tpu.core_type<tc>, window_params = [{transform_indices = @transform_0, window_bounds = array<i64: 32, 16>}, {transform_indices = @transform_1, window_bounds = array<i64: 32, 48>}, {transform_indices = @transform_2, window_bounds = array<i64: 32, 3>}]} {
    %c0 = arith.constant 0 : index
    %c0_0 = arith.constant 0 : index
    %0 = vector.load %arg1[%c0, %c0_0] : memref<32x16xf32, #tpu.memory_space<vmem>>, vector<32x16xf32>
    %c0_1 = arith.constant 0 : index
    %c0_2 = arith.constant 0 : index
    %1 = vector.load %arg2[%c0_1, %c0_2] : memref<32x48xf32, #tpu.memory_space<vmem>>, vector<32x48xf32>
    %2 = vector.extract_strided_slice %1 {offsets = [0, 0], sizes = [32, 16], strides = [1, 1]} : vector<32x48xf32> to vector<32x16xf32>
    %3 = arith.mulf %2, %0 : vector<32x16xf32>
    %cst = arith.constant dense<0.000000e+00> : vector<32xf32>
    %4 = vector.multi_reduction <add>, %3, %cst [1] : vector<32x16xf32> to vector<32xf32>
    %5 = vector.shape_cast %4 : vector<32xf32> to vector<32x1xf32>
    %6 = vector.extract_strided_slice %1 {offsets = [0, 16], sizes = [32, 16], strides = [1, 1]} : vector<32x48xf32> to vector<32x16xf32>
    %7 = arith.mulf %6, %0 : vector<32x16xf32>
    %cst_3 = arith.constant dense<0.000000e+00> : vector<32xf32>
    %8 = vector.multi_reduction <add>, %7, %cst_3 [1] : vector<32x16xf32> to vector<32xf32>
    %9 = vector.shape_cast %8 : vector<32xf32> to vector<32x1xf32>
    %10 = vector.extract_strided_slice %1 {offsets = [0, 32], sizes = [32, 16], strides = [1, 1]} : vector<32x48xf32> to vector<32x16xf32>
    %11 = arith.mulf %10, %0 : vector<32x16xf32>
    %cst_4 = arith.constant dense<0.000000e+00> : vector<32xf32>
    %12 = vector.multi_reduction <add>, %11, %cst_4 [1] : vector<32x16xf32> to vector<32xf32>
    %13 = vector.shape_cast %12 : vector<32xf32> to vector<32x1xf32>
    %14 = tpu.concatenate %5, %9, %13 in 1 : vector<32x1xf32>, vector<32x1xf32>, vector<32x1xf32> -> vector<32x3xf32>
    %c0_5 = arith.constant 0 : index
    %c0_6 = arith.constant 0 : index
    %15 = vector.load %arg3[%c0_5, %c0_6] : memref<32x3xf32, #tpu.memory_space<vmem>>, vector<32x3xf32>
    tpu.vector_store %arg3[%c0_5, %c0_6], %14 {strides = array<i32>} : memref<32x3xf32, #tpu.memory_space<vmem>>, vector<32x3xf32>,
    return
  }
  func.func @transform_0(%arg0: i32) -> (i32, i32) {
    %c0_i32 = arith.constant 0 : i32
    %c0_i32_0 = arith.constant 0 : i32
    return %arg0, %c0_i32 : i32, i32
  }
  func.func @transform_1(%arg0: i32) -> (i32, i32) {
    %c0_i32 = arith.constant 0 : i32
    %c0_i32_0 = arith.constant 0 : i32
    return %arg0, %c0_i32 : i32, i32
  }
  func.func @transform_2(%arg0: i32) -> (i32, i32) {
    %c0_i32 = arith.constant 0 : i32
    %c0_i32_0 = arith.constant 0 : i32
    return %arg0, %c0_i32 : i32, i32
  }
}

</mosaic_0001>

<bundles_post_ra>
// kernel: tpu_custom_call.1
= control target key start
LH: loop header
LB: loop body
LE: loop exit
PB: predicated region body
PF: predicated region fallthrough
CT: control target
= control target key end

     0   :  { %s421_s9 = smov 0   ;;  %s470_s0 = inlined_call_operand.vmem [shape: f32[256,16], index: 0, kind: input, shape index: {}]   ;;  %s471_s1 = inlined_call_operand.vmem [shape: f32[256,48], index: 1, kind: input, shape index: {}]   ;;  %s472_s2 = inlined_call_operand.vmem [shape: f32[256,3], index: 2, kind: output, shape index: {}]  }
   0x1 LB: > { %s369_s10 = sadd.s32 4294967295, %s400_s9   ;;  %p373_p0 = scmp.ge.s32.totalorder %s400_s9, 1  ;;  %s400_s9 = sphi %s421_s9, %s12_s9  }
   0x2   : > { %p124_p1 = scmp.lt.s32.totalorder %s400_s9, 9 }
   0x4   : > { %p125_p2 = pnand %p373_p0, %p124_p1 }
   0x5   : > { %s374_s11 = sshll.u32 (!%p125_p2), %s369_s10, 2  ;;  %s402_s16 = smov (!%p125_p2), 16  }
   0x6   : > { %128 = sbr.rel (%p125_p2) target bundleno = 404 (0x194), region = 28  ;;  %p152_p3 = scmp.lt.s32.totalorder (!%p125_p2), %s374_s11, 31 }
   0x7   : > { %s403_s17 = smov (!%p125_p2), 32   ;;  %s404_s21 = smov (!%p125_p2), 112  }
   0x8   : > { %s405_s22 = smov (!%p125_p2), 96  }
   0xb   : > { %s474_s11 = smov (!%p152_p3, %s374_s11), 31  ;;  %vm181_vm0 = vcmask 130048   ;;  %vm286_vm1 = vcmask 7168   ;;  %vm291_vm2 = vcmask 15360   ;;  %vm296_vm3 = vcmask 23552  }
   0xc   : > { %s429_s12 = sshll.u32 %s474_s11, 3 }
   0xd   : > { %s155_s15 = scalar_lea.vmem %s470_s0, %s429_s12  ;;  %s161_s20 = scalar_lea.vmem %s471_s1, %s429_s12 }
   0xe   : > { %v169_v0 = vld [vmem:[%s155_s15] sm:$0xff]  ;;  %v171_v1 = vld [vmem:[%s155_s15 + $0x10] sm:$0xff]  ;;  %v170_v2 = vld [vmem:[%s155_s15 + $0x8] sm:$0xff]  ;;  %s167_s25 = scalar_lea.vmem %s472_s2, %s429_s12 }
   0xf   : > { %198 = vrot.lane.b32.xlu0 %v169_v0, %s402_s16  ;;  %202 = vrot.lane.b32.xlu1 %v171_v1, %s402_s16  ;;  %v172_v3 = vld [vmem:[%s155_s15 + $0x18] sm:$0xff]  ;;  %v173_v4 = vld [vmem:[%s161_s20] sm:$0xff] }
  0x10   : > { %v175_v6 = vld [vmem:[%s161_s20 + $0x10] sm:$0xff]  ;;  %v174_v9 = vld [vmem:[%s161_s20 + $0x8] sm:$0xff]  ;;  %v176_v12 = vld [vmem:[%s161_s20 + $0x18] sm:$0xff]  ;;  %v177_v24 = vmul.f32 %v173_v4, %v169_v0 }
  0x11   : > { %v179_v26 = vmul.f32 %v175_v6, %v171_v1  ;;  %v180_v28 = vmul.f32 %v176_v12, %v172_v3  ;;  %v178_v29 = vmul.f32 %v174_v9, %v170_v2 }
  0x12   : > { %v182_v25 = vsel %vm181_vm0, %v177_v24, 0.0 }
  0x13   : > { %200 = vrot.lane.b32.xlu0 %v170_v2, %s402_s16  ;;  %204 = vrot.lane.b32.xlu1 %v172_v3, %s402_s16  ;;  %v188_v27 = vsel %vm181_vm0, %v179_v26, 0.0  ;;  %v191_v30 = vsel %vm181_vm0, %v180_v28, 0.0  ;;  %v185_v31 = vsel %vm181_vm0, %v178_v29, 0.0 }
  0x17   : > { %242 = vrot.lane.b32.xlu0 %v169_v0, %s403_s17  ;;  %244 = vrot.lane.b32.xlu1 %v170_v2, %s403_s17 }
  0x1b   : > { %246 = vrot.lane.b32.xlu0 %v171_v1, %s403_s17  ;;  %248 = vrot.lane.b32.xlu1 %v172_v3, %s403_s17 }
  0x81   : > { %v199_v5 = vpop.permute.xlu0 %198  ;;  %v203_v7 = vpop.permute.xlu1 %202 }
  0x82   : > { %v210_v8 = vmul.f32 %v199_v5, %v173_v4  ;;  %v212_v10 = vmul.f32 %v203_v7, %v175_v6 }
  0x84   : > { %218 = vrot.lane.b32.xlu0 %v210_v8, %s404_s21 }
  0x85   : > { %v201_v11 = vpop.permute.xlu0 %200  ;;  %v205_v13 = vpop.permute.xlu1 %204 }
  0x86   : > { %v211_v14 = vmul.f32 %v201_v11, %v174_v9  ;;  %v213_v15 = vmul.f32 %v205_v13, %v176_v12 }
  0x88   : > { %222 = vrot.lane.b32.xlu0 %v212_v10, %s404_s21  ;;  %220 = vrot.lane.b32.xlu1 %v211_v14, %s404_s21 }
  0x89   : > { %v243_v16 = vpop.permute.xlu0 %242  ;;  %v245_v17 = vpop.permute.xlu1 %244 }
  0x8a   : > { %v254_v18 = vmul.f32 %v243_v16, %v173_v4  ;;  %v255_v19 = vmul.f32 %v245_v17, %v174_v9 }
  0x8c   : > { %224 = vrot.lane.b32.xlu1 %v213_v15, %s404_s21  ;;  %262 = vrot.lane.b32.xlu0 %v254_v18, %s405_s22 }
  0x8d   : > { %v247_v20 = vpop.permute.xlu0 %246  ;;  %v249_v21 = vpop.permute.xlu1 %248 }
  0x8e   : > { %v256_v22 = vmul.f32 %v247_v20, %v175_v6  ;;  %v257_v23 = vmul.f32 %v249_v21, %v176_v12 }
  0x90   : > { %264 = vrot.lane.b32.xlu1 %v255_v19, %s405_s22  ;;  %266 = vrot.lane.b32.xlu0 %v256_v22, %s405_s22 }
  0x94   : > { %268 = vrot.lane.b32.xlu1 %v257_v23, %s405_s22 }
  0xaf   : > { %183 = vadd.xlane.f32.xlu0 %v182_v25 }
  0xb3   : > { %189 = vadd.xlane.f32.xlu0 %v188_v27 }
  0xb7   : > { %192 = vadd.xlane.f32.xlu0 %v191_v30 }
  0xb8   : > { %186 = vadd.xlane.f32.xlu1 %v185_v31 }
  0xf6   : > { %v219_v32 = vpop.permute.xlu0 %218 }
  0xf7   : > { %v230_v33 = vsel %vm181_vm0, %v219_v32, 0.0 }
  0xf8   : > { %231 = vadd.xlane.f32.xlu1 %v230_v33 }
  0xfa   : > { %v221_v34 = vpop.permute.xlu1 %220  ;;  %v223_v35 = vpop.permute.xlu0 %222 }
  0xfb   : > { %v236_v36 = vsel %vm181_vm0, %v223_v35, 0.0  ;;  %v233_v37 = vsel %vm181_vm0, %v221_v34, 0.0 }
  0xfc   : > { %237 = vadd.xlane.f32.xlu1 %v236_v36  ;;  %234 = vadd.xlane.f32.xlu0 %v233_v37 }
  0xfe   : > { %v225_v38 = vpop.permute.xlu1 %224  ;;  %v263_v39 = vpop.permute.xlu0 %262 }
  0xff   : > { %v274_v40 = vsel %vm181_vm0, %v263_v39, 0.0  ;;  %v239_v41 = vsel %vm181_vm0, %v225_v38, 0.0 }
 0x100   : > { %275 = vadd.xlane.f32.xlu1 %v274_v40  ;;  %240 = vadd.xlane.f32.xlu0 %v239_v41 }
 0x102   : > { %v265_v42 = vpop.permute.xlu1 %264  ;;  %v267_v43 = vpop.permute.xlu0 %266 }
 0x103   : > { %v280_v44 = vsel %vm181_vm0, %v267_v43, 0.0  ;;  %v277_v45 = vsel %vm181_vm0, %v265_v42, 0.0 }
 0x104   : > { %281 = vadd.xlane.f32.xlu1 %v280_v44  ;;  %278 = vadd.xlane.f32.xlu0 %v277_v45 }
 0x106   : > { %v269_v46 = vpop.permute.xlu1 %268 }
 0x107   : > { %v283_v47 = vsel %vm181_vm0, %v269_v46, 0.0 }
 0x108   : > { %284 = vadd.xlane.f32.xlu0 %v283_v47 }
 0x138   : > { %v184_v48 = vpop.xlane.xlu0 %183 }
 0x13c   : > { %v190_v49 = vpop.xlane.xlu0 %189 }
 0x140   : > { %v193_v51 = vpop.xlane.xlu0 %192 }
 0x141   : > { %v187_v50 = vpop.xlane.xlu1 %186 }
 0x181   : > { %v232_v52 = vpop.xlane.xlu1 %231 }
 0x182   : > { %v287_v55 = vsel %vm286_vm1, %v184_v48, %v232_v52 }
 0x185   : > { %v238_v53 = vpop.xlane.xlu1 %237  ;;  %v235_v54 = vpop.xlane.xlu0 %234 }
 0x186   : > { %v289_v59 = vsel %vm286_vm1, %v190_v49, %v238_v53  ;;  %v288_v60 = vsel %vm286_vm1, %v187_v50, %v235_v54 }
 0x189   : > { %v276_v56 = vpop.xlane.xlu1 %275  ;;  %v241_v57 = vpop.xlane.xlu0 %240 }
 0x18a   : > { %v292_v58 = vsel %vm291_vm2, %v287_v55, %v276_v56  ;;  %v290_v1 = vsel %vm286_vm1, %v193_v51, %v241_v57 }
 0x18b   : > { %297 = vst.msk [vmem:[%s167_s25] sm:$0xff] %vm296_vm3, %v292_v58 }
 0x18d   : > { %v282_v61 = vpop.xlane.xlu1 %281  ;;  %v279_v62 = vpop.xlane.xlu0 %278 }
 0x18e   : > { %v294_v63 = vsel %vm291_vm2, %v289_v59, %v282_v61  ;;  %v293_v0 = vsel %vm291_vm2, %v288_v60, %v279_v62 }
 0x18f   : > { %299 = vst.msk [vmem:[%s167_s25 + $0x10] sm:$0xff] %vm296_vm3, %v294_v63  ;;  %298 = vst.msk [vmem:[%s167_s25 + $0x8] sm:$0xff] %vm296_vm3, %v293_v0 }
 0x191   : > { %v285_v2 = vpop.xlane.xlu0 %284 }
 0x192   : > { %v295_v3 = vsel %vm291_vm2, %v290_v1, %v285_v2 }
 0x193   : > { %300 = vst.msk [vmem:[%s167_s25 + $0x18] sm:$0xff] %vm296_vm3, %v295_v3 }
 0x194 PF: > { %s12_s9 = sadd.s32 1, %s400_s9  }
 0x195   : > { %p9_p4 = scmp.ge.s32.totalorder %s12_s9, 10  }
 0x197   :  { %11 = sbr.rel (!%p9_p4) target bundleno = 1 (0x1), region = 61 }

</bundles_post_ra>
